<compile_context>
chip_gen: v5e
topology: v5e:2x2
jax: 0.10.0
libtpu: 0.0.40
codegen_flags: <defaults>
</compile_context>

<pallas_src>
import jax
import jax.numpy as jnp
from jax.experimental import pallas as pl
from jax.experimental.pallas import tpu as pltpu

HIDDEN = 32  # A3TGCN out_channels, fixed by the module (tgnn out_channels=32)


def tgnn_kernel(x_ref, a_ref, wbig_ref, bbig_ref, r_ref, wlin_ref, blin_ref,
                out_ref):
    ph = r_ref.shape[0]                      # P * HIDDEN (static)

    # (N, P*F) @ (P*F, 2*P*H): block-structured weight -> all periods' z|h pre-acts.
    xw = jnp.dot(x_ref[...], wbig_ref[...], preferred_element_type=jnp.float32)
    # Single graph propagation over the full lane-dense slab, bias pre-tiled.
    g = jnp.dot(a_ref[...], xw, preferred_element_type=jnp.float32) + bbig_ref[...]

    z = jax.nn.sigmoid(g[:, :ph])            # (N, P*H)  update gate, all periods
    h_tilde = jnp.tanh(g[:, ph:])            # (N, P*H)  candidate, all periods
    h = (1.0 - z) * h_tilde                  # H_t = Z*0 + (1-Z)*H~   (H0 = 0)

    # Attention-weighted sum over periods as a structured matmul with kron(probs, I).
    acc = jnp.dot(h, r_ref[...], preferred_element_type=jnp.float32)   # (N, H)

    hr = jnp.maximum(acc, 0.0)               # ReLU
    out_ref[...] = (jnp.dot(hr, wlin_ref[...], preferred_element_type=jnp.float32)
                    + blin_ref[...])         # (N, P)


def normalized_adjacency(edge_index, n):
    """Dense D^-1/2 (A + I) D^-1/2 matching PyG gcn_norm (messages flow src->dst)."""
    src, dst = edge_index[0], edge_index[1]
    a = jnp.zeros((n, n), jnp.float32).at[dst, src].set(1.0)
    a = a + jnp.eye(n, dtype=jnp.float32)
    deg = a.sum(axis=1)
    dinv = jnp.where(deg > 0, jax.lax.rsqrt(deg), 0.0)
    return dinv[:, None] * a * dinv[None, :]


def temporal_gnn_forward(x, edge_index, params):
    n, f, p = x.shape
    h = HIDDEN
    a_hat = normalized_adjacency(edge_index, n)
    probs = jax.nn.softmax(params["attention"]).astype(jnp.float32)

    # Fold the TGCN gate linears into the GCN weights (everything pre-nonlinearity
    # is linear; only the first H columns of the 2H->H linears matter since H0=0).
    wlz = params["lin_z_w"][:, :h].T                       # (H, H)
    wlh = params["lin_h_w"][:, :h].T
    wz = params["conv_z_w"] @ wlz                          # (F, H)
    wh = params["conv_h_w"] @ wlh
    bz = params["conv_z_b"] @ wlz + params["lin_z_b"]      # (H,)
    bh = params["conv_h_b"] @ wlh + params["lin_h_b"]

    # Period-batched, lane-major layout: x_pack[:, t*F:(t+1)*F] = X[:, :, t].
    x_pack = jnp.transpose(x, (0, 2, 1)).reshape(n, p * f).astype(jnp.float32)

    # Block-structured weight (P*F, 2*P*H): z half | h half, one F->H block per period.
    eye_p = jnp.eye(p, dtype=jnp.float32)
    w_big = jnp.concatenate([jnp.kron(eye_p, wz), jnp.kron(eye_p, wh)], axis=1)
    b_big = jnp.concatenate([jnp.tile(bz, p), jnp.tile(bh, p)])[None, :]  # (1, 2*P*H)

    # probs-weighted period reduction as one matmul: (P*H, H) = kron(probs, I_H).
    r_mat = jnp.kron(probs[:, None], jnp.eye(h, dtype=jnp.float32))

    wlin = params["lin_out_w"].T.astype(jnp.float32)       # (H, P)
    blin = params["lin_out_b"][None, :].astype(jnp.float32)

    vmem = pl.BlockSpec(memory_space=pltpu.MemorySpace.VMEM)
    return pl.pallas_call(
        tgnn_kernel,
        out_shape=jax.ShapeDtypeStruct((n, p), jnp.float32),
        in_specs=[vmem] * 7,
        out_specs=vmem,
    )(x_pack, a_hat, w_big, b_big, r_mat, wlin, blin)


def reference(x, edge_index, params):
    """Pure-JAX reference mirroring the PyTorch / PyG-temporal code structure."""
    n, f, p = x.shape
    a_hat = normalized_adjacency(edge_index, n)
    probs = jax.nn.softmax(params["attention"])
    acc = jnp.zeros((n, HIDDEN), jnp.float32)
    h0 = jnp.zeros((n, HIDDEN), jnp.float32)
    for t in range(p):
        xt = x[:, :, t]
        gz = a_hat @ (xt @ params["conv_z_w"]) + params["conv_z_b"]
        gh = a_hat @ (xt @ params["conv_h_w"]) + params["conv_h_b"]
        z = jax.nn.sigmoid(
            jnp.concatenate([gz, h0], 1) @ params["lin_z_w"].T + params["lin_z_b"])
        h_tilde = jnp.tanh(
            jnp.concatenate([gh, h0 * 0.0], 1) @ params["lin_h_w"].T + params["lin_h_b"])
        h = z * h0 + (1.0 - z) * h_tilde
        acc = acc + probs[t] * h
    return jax.nn.relu(acc) @ params["lin_out_w"].T + params["lin_out_b"]


def init_params(key, node_features, periods):
    def glorot(k, shape):
        fan_in, fan_out = shape[1], shape[0]
        lim = (6.0 / (fan_in + fan_out)) ** 0.5
        return jax.random.uniform(k, shape, jnp.float32, -lim, lim)

    ks = jax.random.split(key, 9)
    return {
        # GCNConv weights stored as (in, out); PyG bias init is zeros.
        "conv_z_w": glorot(ks[0], (node_features, HIDDEN)),
        "conv_z_b": jnp.zeros((HIDDEN,), jnp.float32),
        "conv_h_w": glorot(ks[1], (node_features, HIDDEN)),
        "conv_h_b": jnp.zeros((HIDDEN,), jnp.float32),
        # nn.Linear(2*32, 32): weight (out, in)
        "lin_z_w": glorot(ks[2], (HIDDEN, 2 * HIDDEN)),
        "lin_z_b": jax.random.uniform(ks[3], (HIDDEN,), jnp.float32, -0.1, 0.1),
        "lin_h_w": glorot(ks[4], (HIDDEN, 2 * HIDDEN)),
        "lin_h_b": jax.random.uniform(ks[5], (HIDDEN,), jnp.float32, -0.1, 0.1),
        # attention (periods,), uniform(0,1) as in A3TGCN
        "attention": jax.random.uniform(ks[6], (periods,), jnp.float32, 0.0, 1.0),
        # nn.Linear(32, periods): weight (out, in)
        "lin_out_w": glorot(ks[7], (periods, HIDDEN)),
        "lin_out_b": jax.random.uniform(ks[8], (periods,), jnp.float32, -0.1, 0.1),
    }


if __name__ == "__main__":
    N, F, P = 16, 4, 8                      # nodes, node_features, periods (small METR-LA-like)
    key = jax.random.PRNGKey(0)
    kx, kp = jax.random.split(key)

    x = jax.random.normal(kx, (N, F, P), jnp.float32)          # PyG layout (N, F, P)
    # simple bidirectional ring graph in COO format
    idx = jnp.arange(N, dtype=jnp.int32)
    src = jnp.concatenate([idx, (idx + 1) % N])
    dst = jnp.concatenate([(idx + 1) % N, idx])
    edge_index = jnp.stack([src, dst])                          # (2, 2N)

    params = init_params(kp, F, P)

    out = temporal_gnn_forward(x, edge_index, params)
    out = jax.block_until_ready(out)

    ref = reference(x, edge_index, params)
    assert out.shape == (N, P)
    assert jnp.allclose(out, ref, atol=1e-4, rtol=1e-4), float(jnp.max(jnp.abs(out - ref)))
    print("KERNEL_OK")
</pallas_src>

<mosaic_0001>
module attributes {stable_mosaic.version = 11 : i64} {
  func.func @tgnn_kernel(%arg0: memref<16x32xf32, #tpu.memory_space<vmem>>, %arg1: memref<16x16xf32, #tpu.memory_space<vmem>>, %arg2: memref<32x512xf32, #tpu.memory_space<vmem>>, %arg3: memref<1x512xf32, #tpu.memory_space<vmem>>, %arg4: memref<256x32xf32, #tpu.memory_space<vmem>>, %arg5: memref<32x8xf32, #tpu.memory_space<vmem>>, %arg6: memref<1x8xf32, #tpu.memory_space<vmem>>, %arg7: memref<16x8xf32, #tpu.memory_space<vmem>>) attributes {dimension_semantics = [], scalar_prefetch = 0 : i64, scratch_operands = 0 : i64, tpu.core_type = #tpu.core_type<tc>} {
    %c0 = arith.constant 0 : index
    %c0_0 = arith.constant 0 : index
    %0 = vector.load %arg0[%c0, %c0_0] : memref<16x32xf32, #tpu.memory_space<vmem>>, vector<16x32xf32>
    %c0_1 = arith.constant 0 : index
    %c0_2 = arith.constant 0 : index
    %1 = vector.load %arg2[%c0_1, %c0_2] : memref<32x512xf32, #tpu.memory_space<vmem>>, vector<32x512xf32>
    %cst = arith.constant dense<0.000000e+00> : vector<16x512xf32>
    %2 = tpu.matmul %0, %1, %cst {dimension_numbers = #tpu.dot_dimension_numbers<[1], [0], [0], [1], [0, 0, 1, 1], [], []>} : vector<16x32xf32>, vector<32x512xf32>, vector<16x512xf32> -> vector<16x512xf32>
    %c0_3 = arith.constant 0 : index
    %c0_4 = arith.constant 0 : index
    %3 = vector.load %arg1[%c0_3, %c0_4] : memref<16x16xf32, #tpu.memory_space<vmem>>, vector<16x16xf32>
    %cst_5 = arith.constant dense<0.000000e+00> : vector<16x512xf32>
    %4 = tpu.matmul %3, %2, %cst_5 {dimension_numbers = #tpu.dot_dimension_numbers<[1], [0], [0], [1], [0, 0, 1, 1], [], []>} : vector<16x16xf32>, vector<16x512xf32>, vector<16x512xf32> -> vector<16x512xf32>
    %c0_6 = arith.constant 0 : index
    %c0_7 = arith.constant 0 : index
    %5 = vector.load %arg3[%c0_6, %c0_7] : memref<1x512xf32, #tpu.memory_space<vmem>>, vector<1x512xf32>
    %6 = vector.broadcast %5 : vector<1x512xf32> to vector<16x512xf32>
    %7 = arith.addf %4, %6 : vector<16x512xf32>
    %8 = vector.extract_strided_slice %7 {offsets = [0, 0], sizes = [16, 256], strides = [1, 1]} : vector<16x512xf32> to vector<16x256xf32>
    %9 = arith.negf %8 : vector<16x256xf32>
    %10 = math.exp %9 : vector<16x256xf32>
    %cst_8 = arith.constant 1.000000e+00 : f32
    %11 = vector.broadcast %cst_8 : f32 to vector<16x256xf32>
    %12 = arith.addf %11, %10 : vector<16x256xf32>
    %13 = arith.divf %11, %12 : vector<16x256xf32>
    %14 = vector.extract_strided_slice %7 {offsets = [0, 256], sizes = [16, 256], strides = [1, 1]} : vector<16x512xf32> to vector<16x256xf32>
    %15 = math.tanh %14 : vector<16x256xf32>
    %cst_9 = arith.constant 1.000000e+00 : f32
    %16 = vector.broadcast %cst_9 : f32 to vector<16x256xf32>
    %17 = arith.subf %16, %13 : vector<16x256xf32>
    %18 = arith.mulf %17, %15 : vector<16x256xf32>
    %c0_10 = arith.constant 0 : index
    %c0_11 = arith.constant 0 : index
    %19 = vector.load %arg4[%c0_10, %c0_11] : memref<256x32xf32, #tpu.memory_space<vmem>>, vector<256x32xf32>
    %cst_12 = arith.constant dense<0.000000e+00> : vector<16x32xf32>
    %20 = tpu.matmul %18, %19, %cst_12 {dimension_numbers = #tpu.dot_dimension_numbers<[1], [0], [0], [1], [0, 0, 1, 1], [], []>} : vector<16x256xf32>, vector<256x32xf32>, vector<16x32xf32> -> vector<16x32xf32>
    %cst_13 = arith.constant 0.000000e+00 : f32
    %21 = vector.broadcast %cst_13 : f32 to vector<16x32xf32>
    %22 = arith.maximumf %20, %21 : vector<16x32xf32>
    %c0_14 = arith.constant 0 : index
    %c0_15 = arith.constant 0 : index
    %23 = vector.load %arg5[%c0_14, %c0_15] : memref<32x8xf32, #tpu.memory_space<vmem>>, vector<32x8xf32>
    %cst_16 = arith.constant dense<0.000000e+00> : vector<16x8xf32>
    %24 = tpu.matmul %22, %23, %cst_16 {dimension_numbers = #tpu.dot_dimension_numbers<[1], [0], [0], [1], [0, 0, 1, 1], [], []>} : vector<16x32xf32>, vector<32x8xf32>, vector<16x8xf32> -> vector<16x8xf32>
    %c0_17 = arith.constant 0 : index
    %c0_18 = arith.constant 0 : index
    %25 = vector.load %arg6[%c0_17, %c0_18] : memref<1x8xf32, #tpu.memory_space<vmem>>, vector<1x8xf32>
    %26 = vector.broadcast %25 : vector<1x8xf32> to vector<16x8xf32>
    %27 = arith.addf %24, %26 : vector<16x8xf32>
    %c0_19 = arith.constant 0 : index
    %c0_20 = arith.constant 0 : index
    %28 = vector.load %arg7[%c0_19, %c0_20] : memref<16x8xf32, #tpu.memory_space<vmem>>, vector<16x8xf32>
    tpu.vector_store %arg7[%c0_19, %c0_20], %27 {strides = array<i32>} : memref<16x8xf32, #tpu.memory_space<vmem>>, vector<16x8xf32>,
    return
  }
}

</mosaic_0001>

<bundles_post_ra>
// kernel: tpu_custom_call.1
= control target key start
LH: loop header
LB: loop body
LE: loop exit
PB: predicated region body
PF: predicated region fallthrough
CT: control target
= control target key end

     0   :  { %vm44_vm0 = vcmask 261120   ;;  %vm155_vm1 = vcmask 130048   ;;  %s802_s2 = inlined_call_operand.vmem [shape: f32[32,512], index: 2, kind: input, shape index: {}]   ;;  %s803_s0 = inlined_call_operand.vmem [shape: f32[16,32], index: 0, kind: input, shape index: {}]   ;;  %s804_s1 = inlined_call_operand.vmem [shape: f32[16,16], index: 1, kind: input, shape index: {}]   ;;  %s805_s4 = inlined_call_operand.vmem [shape: f32[256,32], index: 4, kind: input, shape index: {}]   ;;  %s806_s3 = inlined_call_operand.vmem [shape: f32[1,512], index: 3, kind: input, shape index: {}]   ;;  %s807_s5 = inlined_call_operand.vmem [shape: f32[32,8], index: 5, kind: input, shape index: {}]   ;;  %s808_s6 = inlined_call_operand.vmem [shape: f32[1,8], index: 6, kind: input, shape index: {}]   ;;  %s809_s7 = inlined_call_operand.vmem [shape: f32[16,8], index: 7, kind: output, shape index: {}]  }
   0x1   :  { %v40_v0 = vld [vmem:[%s802_s2 + $0x60] sm:$0xff]  ;;  %v42_v2 = vld [vmem:[%s802_s2 + $0x70] sm:$0xff]  ;;  %v41_v6 = vld [vmem:[%s802_s2 + $0x68] sm:$0xff] }
   0x2   :  { %v36_v1 = vld [vmem:[%s802_s2 + $0x40] sm:$0xff]  ;;  %63 = vmatpush.msra.mxu3 %v40_v0  ;;  %109 = vmatpush.msra.mxu2 %v42_v2  ;;  %v38_v4 = vld [vmem:[%s802_s2 + $0x50] sm:$0xff]  ;;  %v37_v7 = vld [vmem:[%s802_s2 + $0x48] sm:$0xff] }
   0x3   :  { %v32_v3 = vld [vmem:[%s802_s2 + $0x20] sm:$0xff]  ;;  %v34_v5 = vld [vmem:[%s802_s2 + $0x30] sm:$0xff]  ;;  %488 = vmatpush.msra.mxu1 %v41_v6  ;;  %86 = vmatpush.msra.mxu0 %v41_v6  ;;  %v43_v11 = vld [vmem:[%s802_s2 + $0x78] sm:$0xff] }
   0x4   :  { %64 = vmatpush.msra.mxu3 %v36_v1  ;;  %v28_v8 = vld [vmem:[%s802_s2] sm:$0xff]  ;;  %110 = vmatpush.msra.mxu2 %v38_v4  ;;  %v30_v10 = vld [vmem:[%s802_s2 + $0x10] sm:$0xff]  ;;  %v33_v12 = vld [vmem:[%s802_s2 + $0x28] sm:$0xff] }
   0x5   :  { %v26_v9 = vld [vmem:[%s803_s0] sm:$0xff]  ;;  %489 = vmatpush.msra.mxu1 %v37_v7  ;;  %87 = vmatpush.msra.mxu0 %v37_v7  ;;  %v39_v13 = vld [vmem:[%s802_s2 + $0x58] sm:$0xff]  ;;  %v29_v14 = vld [vmem:[%s802_s2 + $0x8] sm:$0xff] }
   0x6   :  { %65 = vmatpush.msra.mxu3 %v32_v3  ;;  %111 = vmatpush.msra.mxu2 %v34_v5  ;;  %v27_v15 = vld [vmem:[%s803_s0 + $0x8] sm:$0xff]  ;;  %v35_v16 = vld [vmem:[%s802_s2 + $0x38] sm:$0xff]  ;;  %v143_v21 = vld [vmem:[%s804_s1] sm:$0xff] }
   0x7   :  { %490 = vmatpush.msra.mxu1 %v33_v12  ;;  %88 = vmatpush.msra.mxu0 %v33_v12  ;;  %v31_v17 = vld [vmem:[%s802_s2 + $0x18] sm:$0xff]  ;;  %v144_v24 = vld [vmem:[%s804_s1 + $0x8] sm:$0xff]  ;;  %v372_v30 = vld [vmem:[%s805_s4 + $0xf0] sm:$0xff] }
   0x8   :  { %66 = vmatpush.msra.mxu3 %v28_v8  ;;  %112 = vmatpush.msra.mxu2 %v30_v10  ;;  %v373_v28 = vld [vmem:[%s805_s4 + $0xf8] sm:$0xff]  ;;  %v356_v31 = vld [vmem:[%s805_s4 + $0x70] sm:$0xff]  ;;  %v371_v32 = vld [vmem:[%s805_s4 + $0xe8] sm:$0xff] }
   0x9   :  { %466 = vmatmul.msk.f32.vlgmr.msra.gmra.mxu3 %vm44_vm0, %v26_v9  ;;  %470 = vmatmul.msk.f32.vlgmr.msra.gmra.mxu2 %vm44_vm0, %v26_v9  ;;  %v357_v29 = vld [vmem:[%s805_s4 + $0x78] sm:$0xff]  ;;  %v355_v33 = vld [vmem:[%s805_s4 + $0x68] sm:$0xff]  ;;  %v370_v34 = vld [vmem:[%s805_s4 + $0xe0] sm:$0xff] }
   0xa   :  { %132 = vmatpush.msrb.mxu3 %v43_v11  ;;  %491 = vmatpush.msra.mxu1 %v29_v14  ;;  %v354_v35 = vld [vmem:[%s805_s4 + $0x60] sm:$0xff]  ;;  %v369_v36 = vld [vmem:[%s805_s4 + $0xd8] sm:$0xff]  ;;  %v368_v38 = vld [vmem:[%s805_s4 + $0xd0] sm:$0xff] }
   0xb   :  { %89 = vmatpush.msra.mxu0 %v29_v14  ;;  %469 = vmatmul.msk.f32.vlgmr.msra.gmra.mxu1 %vm44_vm0, %v27_v15  ;;  %v353_v37 = vld [vmem:[%s805_s4 + $0x58] sm:$0xff]  ;;  %v669_v39 = vld [vmem:[%s806_s3] sm:$0xf]  ;;  %v352_v40 = vld [vmem:[%s805_s4 + $0x50] sm:$0xff] }
   0xc   :  { %133 = vmatpush.msrb.mxu3 %v39_v13  ;;  %468 = vmatmul.msk.f32.vlgmr.msra.gmra.mxu0 %vm44_vm0, %v26_v9  ;;  %v367_v41 = vld [vmem:[%s805_s4 + $0xc8] sm:$0xff]  ;;  %v148_v43 = vperm.slane %v669_v39, 1  ;;  %v366_v44 = vld [vmem:[%s805_s4 + $0xc0] sm:$0xff]  ;;  %v365_v46 = vld [vmem:[%s805_s4 + $0xb8] sm:$0xff]  ;;  %v147_v58 = vperm.slane %v669_v39, 0 }
   0xd   :  { %v351_v42 = vld [vmem:[%s805_s4 + $0x48] sm:$0xff]  ;;  %v350_v45 = vld [vmem:[%s805_s4 + $0x40] sm:$0xff]  ;;  %v349_v48 = vld [vmem:[%s805_s4 + $0x38] sm:$0xff] }
   0xe   :  { %134 = vmatpush.msrb.mxu3 %v35_v16  ;;  %v364_v50 = vld [vmem:[%s805_s4 + $0xb0] sm:$0xff]  ;;  %v363_v53 = vld [vmem:[%s805_s4 + $0xa8] sm:$0xff]  ;;  %v362_v55 = vld [vmem:[%s805_s4 + $0xa0] sm:$0xff] }
   0xf   :  { %v348_v51 = vld [vmem:[%s805_s4 + $0x30] sm:$0xff]  ;;  %v347_v54 = vld [vmem:[%s805_s4 + $0x28] sm:$0xff]  ;;  %v346_v56 = vld [vmem:[%s805_s4 + $0x20] sm:$0xff] }
  0x10   :  { %135 = vmatpush.msrb.mxu3 %v31_v17  ;;  %v361_v57 = vld [vmem:[%s805_s4 + $0x98] sm:$0xff]  ;;  %v360_v60 = vld [vmem:[%s805_s4 + $0x90] sm:$0xff]  ;;  %v359_v2 = vld [vmem:[%s805_s4 + $0x88] sm:$0xff] }
  0x11   :  { %467 = vmatmul.msk.f32.gmra.mxu3 %vm44_vm0, %v27_v15  ;;  %471 = vmatmul.msk.f32.gmra.mxu2 %vm44_vm0, %v27_v15  ;;  %v345_v59 = vld [vmem:[%s805_s4 + $0x18] sm:$0xff]  ;;  %v344_v1 = vld [vmem:[%s805_s4 + $0x10] sm:$0xff]  ;;  %v343_v3 = vld [vmem:[%s805_s4 + $0x8] sm:$0xff] }
  0x12   :  { %v358_v6 = vld [vmem:[%s805_s4 + $0x80] sm:$0xff] }
  0x19   :  { %472 = vmatmul.msk.f32.vlgmr.msrb.gmra.mxu3 %vm44_vm0, %v26_v9  ;;  %v342_v9 = vld [vmem:[%s805_s4] sm:$0xff] }
  0x21   :  { %473 = vmatmul.msk.f32.gmra.mxu3 %vm44_vm0, %v27_v15 }
  0x88   :  { %v94_v18 = vpop.f32.mrf.mxu1 }
  0x89   :  { %199 = vmatpush.msrb.mxu1 %v94_v18  ;;  %v91_v20 = vpop.f32.mrf.mxu0  ;;  %v425_v18 = vld [vmem:[%s807_s5 + $0x18] sm:$0xff] }
  0x8b   :  { %200 = vmatpush.msrb.mxu1 %v91_v20 }
  0x8c   :  { %v68_v19 = vpop.f32.mrf.mxu3  ;;  %v114_v22 = vpop.f32.mrf.mxu2  ;;  %476 = vmatmul.msk.f32.vlgmr.msrb.gmra.mxu1 %vm155_vm1, %v143_v21 }
  0x8d   :  { %397 = vmatpush.msra.mxu1 %v373_v28 }
  0x8f   :  { %398 = vmatpush.msra.mxu1 %v372_v30 }
  0x91   :  { %399 = vmatpush.msra.mxu1 %v371_v32 }
  0x93   :  { %400 = vmatpush.msra.mxu1 %v370_v34 }
  0x94   :  { %v71_v23 = vpop.f32.mrf.mxu3  ;;  %v117_v25 = vpop.f32.mrf.mxu2  ;;  %477 = vmatmul.msk.f32.gmra.mxu1 %vm155_vm1, %v144_v24 }
  0x95   :  { %176 = vmatpush.msrb.mxu0 %v71_v23  ;;  %222 = vmatpush.msrb.mxu2 %v117_v25 }
  0x96   :  { %401 = vmatpush.msra.mxu1 %v369_v36 }
  0x97   :  { %177 = vmatpush.msrb.mxu0 %v68_v19  ;;  %223 = vmatpush.msrb.mxu2 %v114_v22 }
  0x98   :  { %474 = vmatmul.msk.f32.vlgmr.msrb.gmra.mxu0 %vm155_vm1, %v143_v21  ;;  %478 = vmatmul.msk.f32.vlgmr.msrb.gmra.mxu2 %vm155_vm1, %v143_v21 }
  0x99   :  { %374 = vmatpush.msra.mxu0 %v357_v29  ;;  %402 = vmatpush.msra.mxu1 %v368_v38 }
  0x9a   :  { %448 = vmatpush.msra.mxu2 %v425_v18 }
  0x9b   :  { %375 = vmatpush.msra.mxu0 %v356_v31  ;;  %403 = vmatpush.msra.mxu1 %v367_v41 }
  0x9c   :  { %v137_v26 = vpop.f32.mrf.mxu3 }
  0x9d   :  { %376 = vmatpush.msra.mxu0 %v355_v33  ;;  %404 = vmatpush.msra.mxu1 %v366_v44 }
  0x9f   :  { %377 = vmatpush.msra.mxu0 %v354_v35  ;;  %405 = vmatpush.msra.mxu1 %v365_v46 }
  0xa0   :  { %475 = vmatmul.msk.f32.gmra.mxu0 %vm155_vm1, %v144_v24  ;;  %479 = vmatmul.msk.f32.gmra.mxu2 %vm155_vm1, %v144_v24 }
  0xa1   :  { %378 = vmatpush.msra.mxu0 %v353_v37  ;;  %406 = vmatpush.msra.mxu1 %v364_v50 }
  0xa3   :  { %379 = vmatpush.msra.mxu0 %v352_v40  ;;  %407 = vmatpush.msra.mxu1 %v363_v53 }
  0xa4   :  { %v140_v27 = vpop.f32.mrf.mxu3 }
  0xa5   :  { %245 = vmatpush.msra.mxu3 %v140_v27  ;;  %380 = vmatpush.msra.mxu0 %v351_v42 }
  0xa6   :  { %408 = vmatpush.msra.mxu1 %v362_v55 }
  0xa7   :  { %246 = vmatpush.msra.mxu3 %v137_v26  ;;  %381 = vmatpush.msra.mxu0 %v350_v45  ;;  %v150_v26 = vperm.slane %v669_v39, 3 }
  0xa8   :  { %480 = vmatmul.msk.f32.vlgmr.msra.gmra.mxu3 %vm155_vm1, %v143_v21  ;;  %409 = vmatpush.msra.mxu1 %v361_v57  ;;  %v149_v21 = vperm.slane %v669_v39, 2 }
  0xa9   :  { %382 = vmatpush.msra.mxu0 %v349_v48 }
  0xaa   :  { %410 = vmatpush.msra.mxu1 %v360_v60 }
  0xab   :  { %383 = vmatpush.msra.mxu0 %v348_v51 }
  0xac   :  { %411 = vmatpush.msra.mxu1 %v359_v2 }
  0xad   :  { %384 = vmatpush.msra.mxu0 %v347_v54 }
  0xae   :  { %412 = vmatpush.msra.mxu1 %v358_v6 }
  0xaf   :  { %385 = vmatpush.msra.mxu0 %v346_v56 }
  0xb0   :  { %481 = vmatmul.msk.f32.gmra.mxu3 %vm155_vm1, %v144_v24 }
  0xb1   :  { %386 = vmatpush.msra.mxu0 %v345_v59 }
  0xb3   :  { %387 = vmatpush.msra.mxu0 %v344_v1 }
  0xb5   :  { %388 = vmatpush.msra.mxu0 %v343_v3 }
  0xb7   :  { %389 = vmatpush.msra.mxu0 %v342_v9 }
 0x109   :  { %v202_v47 = vpop.f32.mrf.mxu1 }
 0x10a   :  { %v203_v49 = vadd.f32 %v202_v47, %v148_v43 }
 0x10c   :  { %v483_v52 = vmul.f32 -1.442695, %v203_v49 }
 0x10e   :  { %493 = vpow2.f32 %v483_v52 }
 0x111   :  { %v205_v61 = vpop.f32.mrf.mxu1 }
 0x112   :  { %v206_v63 = vadd.f32 %v205_v61, %v148_v43 }
 0x114   :  { %v494_v4 = vpop.eup %493  ;;  %v485_v5 = vmul.f32 -1.442695, %v206_v63 }
 0x115   :  { %v179_v62 = vpop.f32.mrf.mxu0  ;;  %v267_v7 = vadd.f32 1.0, %v494_v4 }
 0x116   :  { %v180_v0 = vadd.f32 %v179_v62, %v147_v58  ;;  %495 = vpow2.f32 %v485_v5 }
 0x117   :  { %497 = vrcp.f32 %v267_v7  ;;  %vm290_vm2 = vweird.f32 %v267_v7  ;;  %v294_v27 = vand.u32 2147483647, %v267_v7  ;;  %v296_v28 = vand.u32 2147483648, %v267_v7 }
 0x118   :  { %v482_v8 = vmul.f32 -1.442695, %v180_v0 }
 0x119   :  { %vm295_vm5 = vcmp.eq.f32.partialorder %v294_v27, 8.507059e+37  ;;  %v297_v39 = vor.u32 1.1754944e-38, %v296_v28 }
 0x11a   :  { %499 = vpow2.f32 %v482_v8 }
 0x11b   :  { %v225_v22 = vpop.f32.mrf.mxu2 }
 0x11c   :  { %v496_v12 = vpop.eup %495  ;;  %v226_v24 = vadd.f32 %v225_v22, %v149_v21  ;;  %v423_v22 = vld [vmem:[%s807_s5 + $0x8] sm:$0xff] }
 0x11d   :  { %v182_v10 = vpop.f32.mrf.mxu0  ;;  %v498_v13 = vpop.eup %497  ;;  %v736_v14 = vadd.f32 1.0, %v496_v12 }
 0x11e   :  { %v183_v11 = vadd.f32 %v182_v10, %v147_v58  ;;  %v286_v17 = vmul.f32 %v498_v13, %v267_v7  ;;  %vm291_vm3 = vweird.f32 %v498_v13 }
 0x11f   :  { %501 = vrcp.f32 %v736_v14  ;;  %vm750_vm4 = vmor %vm290_vm2, %vm291_vm3  ;;  %vm320_vm6 = vweird.f32 %v736_v14  ;;  %v324_v45 = vand.u32 2147483647, %v736_v14  ;;  %v326_v50 = vand.u32 2147483648, %v736_v14 }
 0x120   :  { %v484_v15 = vmul.f32 -1.442695, %v183_v11  ;;  %v500_v16 = vpop.eup %499  ;;  %v287_v20 = vsub.f32 1.0, %v286_v17  ;;  %vm459_vm3 = vcmask 64512  }
 0x121   :  { %v266_v19 = vadd.f32 1.0, %v500_v16  ;;  %vm769_vm12 = vcmp.eq.f32.partialorder %v324_v45, 8.507059e+37  ;;  %v327_v1 = vor.u32 1.1754944e-38, %v326_v50 }
 0x122   :  { %503 = vpow2.f32 %v484_v15  ;;  %v288_v23 = vmul.f32 %v498_v13, %v287_v20 }
 0x123   :  { %505 = vrcp.f32 %v266_v19  ;;  %v228_v41 = vpop.f32.mrf.mxu2  ;;  %v281_v44 = vand.u32 2147483648, %v266_v19  ;;  %v279_v47 = vand.u32 2147483647, %v266_v19  ;;  %vm275_vm9 = vweird.f32 %v266_v19 }
 0x124   :  { %v289_v30 = vadd.f32 %v498_v13, %v288_v23  ;;  %507 = vtanh.f32 %v226_v24  ;;  %v229_v48 = vadd.f32 %v228_v41, %v149_v21  ;;  %v424_v21 = vld [vmem:[%s807_s5 + $0x10] sm:$0xff]  ;;  %v422_v23 = vld [vmem:[%s807_s5] sm:$0xff] }
 0x125   :  { %v743_v25 = vpop.eup %501  ;;  %v282_v56 = vor.u32 1.1754944e-38, %v281_v44  ;;  %vm280_vm13 = vcmp.eq.f32.partialorder %v279_v47, 8.507059e+37  ;;  %449 = vmatpush.msra.mxu2 %v424_v21 }
 0x126   :  { %v316_v31 = vmul.f32 %v743_v25, %v736_v14  ;;  %v293_v42 = vsel %vm750_vm4, %v498_v13, %v289_v30  ;;  %vm321_vm7 = vweird.f32 %v743_v25 }
 0x127   :  { %v298_v49 = vsel %vm295_vm5, %v297_v39, %v293_v42  ;;  %vm765_vm10 = vmor %vm320_vm6, %vm321_vm7  ;;  %450 = vmatpush.msra.mxu2 %v423_v22 }
 0x128   :  { %v504_v29 = vpop.eup %503  ;;  %v317_v37 = vsub.f32 1.0, %v316_v31  ;;  %v335_v59 = vsub.f32 1.0, %v298_v49 }
 0x129   :  { %v506_v32 = vpop.eup %505  ;;  %v748_v33 = vadd.f32 1.0, %v504_v29  ;;  %451 = vmatpush.msra.mxu2 %v422_v23 }
 0x12a   :  { %v271_v35 = vmul.f32 %v506_v32, %v266_v19  ;;  %v318_v43 = vmul.f32 %v743_v25, %v317_v37  ;;  %vm276_vm8 = vweird.f32 %v506_v32  ;;  %v508_v51 = vpop.eup %507 }
 0x12b   :  { %v248_v36 = vpop.f32.mrf.mxu3  ;;  %509 = vrcp.f32 %v748_v33  ;;  %vm277_vm11 = vmor %vm275_vm9, %vm276_vm8  ;;  %v311_v6 = vand.u32 2147483648, %v748_v33  ;;  %v309_v9 = vand.u32 2147483647, %v748_v33  ;;  %vm305_vm15 = vweird.f32 %v748_v33 }
 0x12c   :  { %v249_v38 = vadd.f32 %v248_v36, %v150_v26  ;;  %v272_v40 = vsub.f32 1.0, %v271_v35  ;;  %v319_v53 = vadd.f32 %v743_v25, %v318_v43 }
 0x12d   :  { %v312_v13 = vor.u32 1.1754944e-38, %v311_v6  ;;  %vm310_vm2 = vcmp.eq.f32.partialorder %v309_v9, 8.507059e+37 }
 0x12e   :  { %511 = vtanh.f32 %v249_v38  ;;  %v273_v46 = vmul.f32 %v506_v32, %v272_v40  ;;  %v323_v4 = vsel %vm765_vm10, %v743_v25, %v319_v53 }
 0x12f   :  { %513 = vtanh.f32 %v229_v48  ;;  %v328_v10 = vsel %vm769_vm12, %v327_v1, %v323_v4 }
 0x130   :  { %v274_v52 = vadd.f32 %v506_v32, %v273_v46  ;;  %v337_v14 = vsub.f32 1.0, %v328_v10 }
 0x131   :  { %v510_v55 = vpop.eup %509 }
 0x132   :  { %v278_v60 = vsel %vm277_vm11, %v506_v32, %v274_v52  ;;  %v301_v61 = vmul.f32 %v510_v55, %v748_v33  ;;  %vm306_vm14 = vweird.f32 %v510_v55  ;;  %v492_v32 = vld [vmem:[%s808_s6] ss:$0 sm:$0xff] }
 0x133   :  { %v251_v58 = vpop.f32.mrf.mxu3  ;;  %v283_v0 = vsel %vm280_vm13, %v282_v56, %v278_v60  ;;  %vm307_vm1 = vmor %vm305_vm15, %vm306_vm14 }
 0x134   :  { %v512_v62 = vpop.eup %511  ;;  %v252_v63 = vadd.f32 %v251_v58, %v150_v26  ;;  %v334_v3 = vsub.f32 1.0, %v283_v0  ;;  %v302_v5 = vsub.f32 1.0, %v301_v61 }
 0x135   :  { %v339_v2 = vmul.f32 %v512_v62, %v335_v59  ;;  %v514_v12 = vpop.eup %513 }
 0x136   :  { %515 = vtanh.f32 %v252_v63  ;;  %v338_v7 = vmul.f32 %v508_v51, %v334_v3  ;;  %v303_v8 = vmul.f32 %v510_v55, %v302_v5 }
 0x137   :  { %413 = vmatmul.f32.vlgmr.msra.gmra.mxu1 %v339_v2 }
 0x138   :  { %390 = vmatmul.f32.vlgmr.msra.gmra.mxu0 %v338_v7  ;;  %v304_v11 = vadd.f32 %v510_v55, %v303_v8 }
 0x13a   :  { %v308_v15 = vsel %vm307_vm1, %v510_v55, %v304_v11 }
 0x13b   :  { %v313_v17 = vsel %vm310_vm2, %v312_v13, %v308_v15 }
 0x13c   :  { %v516_v16 = vpop.eup %515  ;;  %v336_v19 = vsub.f32 1.0, %v313_v17 }
 0x13d   :  { %v341_v18 = vmul.f32 %v516_v16, %v337_v14 }
 0x13e   :  { %v340_v20 = vmul.f32 %v514_v12, %v336_v19 }
 0x13f   :  { %416 = vmatmul.f32.gmra.mxu1 %v341_v18 }
 0x140   :  { %393 = vmatmul.f32.gmra.mxu0 %v340_v20 }
 0x1b4   :  { %v414_v24 = vpop.f32.mrf.mxu1 }
 0x1b5   :  { %v391_v25 = vpop.f32.mrf.mxu0 }
 0x1b6   :  { %v415_v26 = vadd.f32 %v414_v24, %v391_v25 }
 0x1b8   :  { %v420_v27 = vmax.f32 %v415_v26, 0.0 }
 0x1ba   :  { %486 = vmatmul.msk.f32.vlgmr.msra.gmra.mxu2 %vm44_vm0, %v420_v27 }
 0x1bc   :  { %v417_v28 = vpop.f32.mrf.mxu1 }
 0x1bd   :  { %v394_v29 = vpop.f32.mrf.mxu0 }
 0x1be   :  { %v418_v30 = vadd.f32 %v417_v28, %v394_v29 }
 0x1c0   :  { %v421_v31 = vmax.f32 %v418_v30, 0.0 }
 0x1c2   :  { %487 = vmatmul.msk.f32.gmra.mxu2 %vm44_vm0, %v421_v31 }
 0x23d   :  { %v453_v33 = vpop.f32.mrf.mxu2 }
 0x23e   :  { %v454_v34 = vadd.f32 %v492_v32, %v453_v33 }
 0x240   :  { %460 = vst.msk [vmem:[%s809_s7] sm:$0xff] %vm459_vm3, %v454_v34 }
 0x245   :  { %v456_v35 = vpop.f32.mrf.mxu2 }
 0x246   :  { %v457_v36 = vadd.f32 %v492_v32, %v456_v35 }
 0x248   :  { %461 = vst.msk [vmem:[%s809_s7 + $0x8] sm:$0xff] %vm459_vm3, %v457_v36 }

</bundles_post_ra>
